<compile_context>
chip_gen: v6e
topology: v6e:2x2x1
jax: 0.10.0
libtpu: 0.0.40
codegen_flags: <defaults>
</compile_context>

<pallas_src>
import jax
import jax.numpy as jnp
from jax.experimental import pallas as pl

# ---- synthetic hyperparameters (small) ----
B = 8              # batch (multiple of 8 -> full f32 sublane occupancy)
S = 8              # ctx sequence length
H = 32             # hidden_size (== attention dim)
NAV_EMBED = 16     # hparams.nav_embed_size
ASK_EMBED = 16     # hparams.ask_embed_size
IMG_FEAT = 32      # hparams.img_feature_size
N_NAV_IN = 6       # agent_class.n_input_nav_actions()
N_ASK_IN = 4       # agent_class.n_input_ask_actions()
NUM_NAV_SEL = 3    # nav_action indices per example (summed over dim=1)
PAD_IDX = 0        # padding_idx for nav_embedding
D_IN = NAV_EMBED + ASK_EMBED + IMG_FEAT   # LSTM input size = 64
T_STEPS = 4        # decode timesteps fused into one pallas_call in the demo
# num_lstm_layers = 1, coverage_dim = None (cov path disabled, new_cov is None)


def _decoder_kernel(x_ref, hc0_ref, ctx_ref, maskb_ref,
                    w_ih_t_ref, w_hh_t_ref, b_ref, w_in_ref,
                    w_out_wgt_ref, w_out_h_ref,
                    hc_ref, alpha_ref, htilde_ref):
    """Full T-step decode in one invocation; (h, c) carried in registers."""
    T, Bv, Dv = x_ref.shape
    _, Sv, Hv = ctx_ref.shape

    # ---- loop-invariant loads (done once; hoisted above the recurrence) ----
    ctx = ctx_ref[...]                         # (B, S, H)
    mask_bias = maskb_ref[...]                 # (B, S) additive -1e30 on padded slots
    w_hh_t = w_hh_t_ref[...]                   # (H, 4H)
    w_out_wgt_t = w_out_wgt_ref[...]           # (H, H)   linear_out, weighted-ctx half
    w_out_h_t = w_out_h_ref[...]               # (H, H)   linear_out, hidden half

    # Input projection hoisted out of the recurrence: one (T*B, D) x (D, 4H)
    # MXU matmul (bias fused) instead of T tiny ones.
    x2d = x_ref[...].reshape(T * Bv, Dv)
    gx_all = (jnp.dot(x2d, w_ih_t_ref[...], preferred_element_type=jnp.float32)
              + b_ref[...])                    # (T*B, 4H)

    # linear_in folded into the time-invariant context: ctx_proj = ctx @ W_in.
    ctx_proj = jnp.dot(ctx.reshape(Bv * Sv, Hv), w_in_ref[...],
                       preferred_element_type=jnp.float32).reshape(Bv, Sv, Hv)

    h = hc0_ref[0]                             # (B, H) -- loop carries in vregs
    c = hc0_ref[1]                             # (B, H)

    alphas = []
    htildes = []
    # T is small & static: unrolled at trace time; per-step live values are a
    # handful of quarter-vregs, so no spill risk and the LLO scheduler can
    # overlap MXU/EUP/VPU work across consecutive steps.
    for t in range(T):
        # ---- LSTM cell (PyTorch gate order i, f, g, o) ----
        gates = gx_all[t * Bv:(t + 1) * Bv] + jnp.dot(
            h, w_hh_t, preferred_element_type=jnp.float32)        # (B, 4H)
        # Nonlinearities on the full (B, 4H) vreg: 2 EUP launches, not 4.
        sig = jax.nn.sigmoid(gates)
        tnh = jnp.tanh(gates)
        i_g = sig[:, 0 * Hv:1 * Hv]
        f_g = sig[:, 1 * Hv:2 * Hv]
        o_g = sig[:, 3 * Hv:4 * Hv]
        g_g = tnh[:, 2 * Hv:3 * Hv]
        c = f_g * c + i_g * g_g
        h = o_g * jnp.tanh(c)

        # ---- Attention (coverage disabled; dropout = identity at inference) ----
        # bmm(context, linear_in(h)) == sum(ctx_proj * h) -> VPU mul + XLU reduce
        logits = jnp.sum(ctx_proj * h[:, None, :], axis=-1) + mask_bias   # (B, S)
        m = jnp.max(logits, axis=-1, keepdims=True)
        e = jnp.exp(logits - m)
        attn = e * pl.reciprocal(jnp.sum(e, axis=-1, keepdims=True), approx=True)
        weighted = jnp.sum(attn[:, :, None] * ctx, axis=1)                # (B, H)
        # linear_out split at prep time -> no per-step concatenate.
        h_tilde = jnp.tanh(
            jnp.dot(weighted, w_out_wgt_t, preferred_element_type=jnp.float32)
            + jnp.dot(h, w_out_h_t, preferred_element_type=jnp.float32))

        alphas.append(attn)
        htildes.append(h_tilde)

    # Lane-dense single stores: one contiguous writeback instead of T
    # fragmented masked partial stores.
    alpha_ref[...] = jnp.concatenate(alphas, axis=-1)     # (B, T*S)
    htilde_ref[...] = jnp.concatenate(htildes, axis=-1)   # (B, T*H)
    hc_ref[0] = h                                         # final state, written once
    hc_ref[1] = c


def _run_decoder(prep, x_steps, hc0, ctx, mask_bias):
    """Fused T-step decode: single pallas_call, no grid, everything in VMEM."""
    T, Bv, Dv = x_steps.shape
    _, Sv, Hv = ctx.shape

    hc, alpha_flat, htilde_flat = pl.pallas_call(
        _decoder_kernel,
        out_shape=(
            jax.ShapeDtypeStruct((2, Bv, Hv), jnp.float32),   # final (h, c)
            jax.ShapeDtypeStruct((Bv, T * Sv), jnp.float32),  # alpha, lane-dense
            jax.ShapeDtypeStruct((Bv, T * Hv), jnp.float32),  # h_tilde, lane-dense
        ),
    )(x_steps, hc0, ctx, mask_bias,
      prep['w_ih_t'], prep['w_hh_t'], prep['b'],
      prep['w_in'], prep['w_out_wgt_t'], prep['w_out_h_t'])

    # Wrapper-side layout plumbing back to (T, B, .) -- outside the kernel.
    alpha = alpha_flat.reshape(Bv, T, Sv).transpose(1, 0, 2)
    h_tilde = htilde_flat.reshape(Bv, T, Hv).transpose(1, 0, 2)
    return hc, alpha, h_tilde


def _lstm_input(prep, nav_action, ask_action, feature):
    """Embedding lookups + concat (cheap gathers; plain JAX glue).
    Works for per-step (B, ...) and stacked (T, B, ...) leading dims."""
    nav = jnp.sum(prep['nav_embedding'][nav_action], axis=-2)
    ask = prep['ask_embedding'][ask_action]
    return jnp.concatenate([nav, ask, feature], axis=-1).astype(jnp.float32)
    # TODO(synk): nn.Dropout is identity at inference; training-mode dropout not modeled.


def ask_attn_decoder_regressor_body_forward(prep, tentative_bool, nav_action,
                                            ask_action, feature, h, ctx, ctx_mask,
                                            view_index_mask, cov=None, pred_val=True):
    """Single-timestep forward matching the PyTorch module (T = 1 case of the
    fused kernel).  Returns (new_h, alpha, new_cov, h_tilde, view_index_mask)."""
    del tentative_bool, cov, pred_val           # unused by the torch forward as well
    x = _lstm_input(prep, nav_action, ask_action, feature)            # (B, D_IN)
    hc0 = jnp.stack([h[0][0], h[1][0]], axis=0)                       # (2, B, H)
    # Additive mask: fully-masked rows give a uniform softmax instead of NaN
    # (intentional deviation from the torch -inf fill); safe because logits
    # stay in float32 end-to-end.
    mask_bias = jnp.where(ctx_mask, -1e30, 0.0).astype(jnp.float32)
    hc, alpha, h_tilde = _run_decoder(prep, x[None], hc0, ctx, mask_bias)
    new_h = (hc[0][None, :, :], hc[1][None, :, :])   # (num_layers=1, B, H) each
    new_cov = None                                   # coverage_dim is None
    return new_h, alpha[0], new_cov, h_tilde[0], view_index_mask


@jax.jit
def decode_fused(prep, nav_actions, ask_actions, features, h, ctx, ctx_mask):
    """Fused T-step decode (e.g. teacher-forced scoring): one pallas_call,
    weights/ctx loaded once, (h, c) never leave registers between steps."""
    x = _lstm_input(prep, nav_actions, ask_actions, features)         # (T, B, D_IN)
    hc0 = jnp.stack([h[0][0], h[1][0]], axis=0)
    mask_bias = jnp.where(ctx_mask, -1e30, 0.0).astype(jnp.float32)
    hc, alpha, h_tilde = _run_decoder(prep, x, hc0, ctx, mask_bias)
    return (hc[0][None], hc[1][None]), alpha, h_tilde


def init_params(key):
    """PyTorch-convention parameters (as the nn.Module stores them)."""
    ks = jax.random.split(key, 8)

    def u(k, shape, scale=0.1):
        return jax.random.uniform(k, shape, jnp.float32, -1.0, 1.0) * scale

    nav_emb = u(ks[0], (N_NAV_IN, NAV_EMBED)).at[PAD_IDX].set(0.0)  # padding_idx row = 0
    return dict(
        nav_embedding=nav_emb,
        ask_embedding=u(ks[1], (N_ASK_IN, ASK_EMBED)),
        w_ih=u(ks[2], (4 * H, D_IN)),   # PyTorch LSTM weight_ih_l0
        w_hh=u(ks[3], (4 * H, H)),      # PyTorch LSTM weight_hh_l0
        b_ih=u(ks[4], (4 * H,)),
        b_hh=u(ks[5], (4 * H,)),
        w_in=u(ks[6], (H, H)),          # Attention.linear_in (no bias)
        w_out=u(ks[7], (H, 2 * H)),     # Attention.linear_out (no bias)
    )


def prepare_params(params):
    """One-time param prep: pre-transpose weights, fuse the two LSTM biases,
    split linear_out into its weighted-context / hidden halves.  Done once at
    load time -- no transpose/bias-add/concat materialized per call.
    (At real hidden sizes, cast the resident weights to bf16 here for v6e/v7x.)"""
    return dict(
        nav_embedding=params['nav_embedding'],
        ask_embedding=params['ask_embedding'],
        w_ih_t=params['w_ih'].T,                       # (D_IN, 4H)
        w_hh_t=params['w_hh'].T,                       # (H, 4H)
        b=(params['b_ih'] + params['b_hh'])[None, :],  # (1, 4H)
        w_in=params['w_in'],                           # (H, H); used as ctx @ W_in
        w_out_wgt_t=params['w_out'][:, :H].T,          # (H, H)
        w_out_h_t=params['w_out'][:, H:].T,            # (H, H)
    )


def reference_step(params, nav_action, ask_action, feature, h0, c0, ctx, ctx_mask):
    """Pure-JAX reference of one decode step (PyTorch semantics)."""
    nav = jnp.sum(params['nav_embedding'][nav_action], axis=-2)
    ask = params['ask_embedding'][ask_action]
    x = jnp.concatenate([nav, ask, feature], axis=-1)
    gates = x @ params['w_ih'].T + h0 @ params['w_hh'].T + params['b_ih'] + params['b_hh']
    i_g = jax.nn.sigmoid(gates[:, :H])
    f_g = jax.nn.sigmoid(gates[:, H:2 * H])
    g_g = jnp.tanh(gates[:, 2 * H:3 * H])
    o_g = jax.nn.sigmoid(gates[:, 3 * H:])
    c1 = f_g * c0 + i_g * g_g
    h1 = o_g * jnp.tanh(c1)
    target = h1 @ params['w_in'].T
    attn = jnp.einsum('bsh,bh->bs', ctx, target)
    attn = jnp.where(ctx_mask, -jnp.inf, attn)
    attn = jax.nn.softmax(attn, axis=-1)
    weighted = jnp.einsum('bs,bsh->bh', attn, ctx)
    h_tilde = jnp.tanh(jnp.concatenate([weighted, h1], axis=1) @ params['w_out'].T)
    return h1, c1, attn, h_tilde


if __name__ == "__main__":
    key = jax.random.PRNGKey(0)
    ks = jax.random.split(key, 9)

    params = init_params(ks[0])
    prep = prepare_params(params)

    nav_actions = jax.random.randint(ks[1], (T_STEPS, B, NUM_NAV_SEL), 0, N_NAV_IN)
    ask_actions = jax.random.randint(ks[2], (T_STEPS, B), 0, N_ASK_IN)
    features = jax.random.normal(ks[3], (T_STEPS, B, IMG_FEAT), jnp.float32)
    h = (jax.random.normal(ks[4], (1, B, H), jnp.float32),
         jax.random.normal(ks[5], (1, B, H), jnp.float32))
    ctx = jax.random.normal(ks[6], (B, S, H), jnp.float32)
    lengths = jax.random.randint(ks[7], (B,), 3, S + 1)
    ctx_mask = jnp.arange(S)[None, :] >= lengths[:, None]   # True == masked (padded)
    view_index_mask = (jnp.arange(B) % 2).astype(bool)      # passed through untouched
    tentative_bool = True

    # ---- single-step forward: matches the PyTorch module's forward() ----
    new_h, alpha, new_cov, h_tilde, vim = ask_attn_decoder_regressor_body_forward(
        prep, tentative_bool, nav_actions[0], ask_actions[0], features[0], h,
        ctx, ctx_mask, view_index_mask)
    jax.block_until_ready((new_h, alpha, h_tilde, vim))

    ref_h1, ref_c1, ref_alpha, ref_htilde = reference_step(
        params, nav_actions[0], ask_actions[0], features[0],
        h[0][0], h[1][0], ctx, ctx_mask)
    assert new_cov is None
    assert jnp.allclose(new_h[0][0], ref_h1, atol=1e-4, rtol=1e-4)
    assert jnp.allclose(new_h[1][0], ref_c1, atol=1e-4, rtol=1e-4)
    assert jnp.allclose(alpha, ref_alpha, atol=5e-3, rtol=5e-3)
    assert jnp.allclose(h_tilde, ref_htilde, atol=5e-3, rtol=5e-3)
    assert bool(jnp.all(vim == view_index_mask))

    # ---- fused multi-step decode: one pallas_call for all T steps ----
    (hn, cn), alphas, htildes = decode_fused(
        prep, nav_actions, ask_actions, features, h, ctx, ctx_mask)
    jax.block_until_ready((hn, cn, alphas, htildes))

    rh, rc = h[0][0], h[1][0]
    for t in range(T_STEPS):
        rh, rc, ra, rht = reference_step(params, nav_actions[t], ask_actions[t],
                                         features[t], rh, rc, ctx, ctx_mask)
        assert jnp.allclose(alphas[t], ra, atol=5e-3, rtol=5e-3)
        assert jnp.allclose(htildes[t], rht, atol=5e-3, rtol=5e-3)
    assert jnp.allclose(hn[0], rh, atol=1e-3, rtol=1e-3)
    assert jnp.allclose(cn[0], rc, atol=1e-3, rtol=1e-3)

    print("KERNEL_OK")
</pallas_src>

<mosaic_0001>
module attributes {stable_mosaic.version = 11 : i64} {
  func.func @_decoder_kernel(%arg0: memref<1x8x64xf32, #tpu.memory_space<vmem>>, %arg1: memref<2x8x32xf32, #tpu.memory_space<vmem>>, %arg2: memref<8x8x32xf32, #tpu.memory_space<vmem>>, %arg3: memref<8x8xf32, #tpu.memory_space<vmem>>, %arg4: memref<64x128xf32, #tpu.memory_space<vmem>>, %arg5: memref<32x128xf32, #tpu.memory_space<vmem>>, %arg6: memref<1x128xf32, #tpu.memory_space<vmem>>, %arg7: memref<32x32xf32, #tpu.memory_space<vmem>>, %arg8: memref<32x32xf32, #tpu.memory_space<vmem>>, %arg9: memref<32x32xf32, #tpu.memory_space<vmem>>, %arg10: memref<2x8x32xf32, #tpu.memory_space<vmem>>, %arg11: memref<8x8xf32, #tpu.memory_space<vmem>>, %arg12: memref<8x32xf32, #tpu.memory_space<vmem>>) attributes {dimension_semantics = [], scalar_prefetch = 0 : i64, scratch_operands = 0 : i64, tpu.core_type = #tpu.core_type<tc>} {
    %c0 = arith.constant 0 : index
    %c0_0 = arith.constant 0 : index
    %c0_1 = arith.constant 0 : index
    %0 = vector.load %arg2[%c0, %c0_0, %c0_1] : memref<8x8x32xf32, #tpu.memory_space<vmem>>, vector<8x8x32xf32>
    %c0_2 = arith.constant 0 : index
    %c0_3 = arith.constant 0 : index
    %1 = vector.load %arg3[%c0_2, %c0_3] : memref<8x8xf32, #tpu.memory_space<vmem>>, vector<8x8xf32>
    %c0_4 = arith.constant 0 : index
    %c0_5 = arith.constant 0 : index
    %2 = vector.load %arg5[%c0_4, %c0_5] : memref<32x128xf32, #tpu.memory_space<vmem>>, vector<32x128xf32>
    %c0_6 = arith.constant 0 : index
    %c0_7 = arith.constant 0 : index
    %3 = vector.load %arg8[%c0_6, %c0_7] : memref<32x32xf32, #tpu.memory_space<vmem>>, vector<32x32xf32>
    %c0_8 = arith.constant 0 : index
    %c0_9 = arith.constant 0 : index
    %4 = vector.load %arg9[%c0_8, %c0_9] : memref<32x32xf32, #tpu.memory_space<vmem>>, vector<32x32xf32>
    %c0_10 = arith.constant 0 : index
    %c0_11 = arith.constant 0 : index
    %c0_12 = arith.constant 0 : index
    %5 = vector.load %arg0[%c0_10, %c0_11, %c0_12] : memref<1x8x64xf32, #tpu.memory_space<vmem>>, vector<1x8x64xf32>
    %6 = vector.shape_cast %5 : vector<1x8x64xf32> to vector<8x64xf32>
    %c0_13 = arith.constant 0 : index
    %c0_14 = arith.constant 0 : index
    %7 = vector.load %arg4[%c0_13, %c0_14] : memref<64x128xf32, #tpu.memory_space<vmem>>, vector<64x128xf32>
    %cst = arith.constant dense<0.000000e+00> : vector<8x128xf32>
    %8 = tpu.matmul %6, %7, %cst {dimension_numbers = #tpu.dot_dimension_numbers<[1], [0], [0], [1], [0, 0, 1, 1], [], []>} : vector<8x64xf32>, vector<64x128xf32>, vector<8x128xf32> -> vector<8x128xf32>
    %c0_15 = arith.constant 0 : index
    %c0_16 = arith.constant 0 : index
    %9 = vector.load %arg6[%c0_15, %c0_16] : memref<1x128xf32, #tpu.memory_space<vmem>>, vector<1x128xf32>
    %10 = vector.broadcast %9 : vector<1x128xf32> to vector<8x128xf32>
    %11 = arith.addf %8, %10 : vector<8x128xf32>
    %12 = vector.shape_cast %0 : vector<8x8x32xf32> to vector<64x32xf32>
    %c0_17 = arith.constant 0 : index
    %c0_18 = arith.constant 0 : index
    %13 = vector.load %arg7[%c0_17, %c0_18] : memref<32x32xf32, #tpu.memory_space<vmem>>, vector<32x32xf32>
    %cst_19 = arith.constant dense<0.000000e+00> : vector<64x32xf32>
    %14 = tpu.matmul %12, %13, %cst_19 {dimension_numbers = #tpu.dot_dimension_numbers<[1], [0], [0], [1], [0, 0, 1, 1], [], []>} : vector<64x32xf32>, vector<32x32xf32>, vector<64x32xf32> -> vector<64x32xf32>
    %15 = vector.shape_cast %14 : vector<64x32xf32> to vector<8x8x32xf32>
    %c0_20 = arith.constant 0 : index
    %c0_21 = arith.constant 0 : index
    %c0_22 = arith.constant 0 : index
    %16 = vector.load %arg1[%c0_20, %c0_21, %c0_22] : memref<2x8x32xf32, #tpu.memory_space<vmem>>, vector<1x8x32xf32>
    %17 = vector.shape_cast %16 : vector<1x8x32xf32> to vector<8x32xf32>
    %c1 = arith.constant 1 : index
    %c0_23 = arith.constant 0 : index
    %c0_24 = arith.constant 0 : index
    %18 = vector.load %arg1[%c1, %c0_23, %c0_24] : memref<2x8x32xf32, #tpu.memory_space<vmem>>, vector<1x8x32xf32>
    %19 = vector.shape_cast %18 : vector<1x8x32xf32> to vector<8x32xf32>
    %cst_25 = arith.constant dense<0.000000e+00> : vector<8x128xf32>
    %20 = tpu.matmul %17, %2, %cst_25 {dimension_numbers = #tpu.dot_dimension_numbers<[1], [0], [0], [1], [0, 0, 1, 1], [], []>} : vector<8x32xf32>, vector<32x128xf32>, vector<8x128xf32> -> vector<8x128xf32>
    %21 = arith.addf %11, %20 : vector<8x128xf32>
    %22 = arith.negf %21 : vector<8x128xf32>
    %23 = math.exp %22 : vector<8x128xf32>
    %cst_26 = arith.constant 1.000000e+00 : f32
    %24 = vector.broadcast %cst_26 : f32 to vector<8x128xf32>
    %25 = arith.addf %24, %23 : vector<8x128xf32>
    %26 = arith.divf %24, %25 : vector<8x128xf32>
    %27 = math.tanh %21 : vector<8x128xf32>
    %28 = vector.extract_strided_slice %26 {offsets = [0, 0], sizes = [8, 32], strides = [1, 1]} : vector<8x128xf32> to vector<8x32xf32>
    %29 = vector.extract_strided_slice %26 {offsets = [0, 32], sizes = [8, 32], strides = [1, 1]} : vector<8x128xf32> to vector<8x32xf32>
    %30 = vector.extract_strided_slice %26 {offsets = [0, 96], sizes = [8, 32], strides = [1, 1]} : vector<8x128xf32> to vector<8x32xf32>
    %31 = vector.extract_strided_slice %27 {offsets = [0, 64], sizes = [8, 32], strides = [1, 1]} : vector<8x128xf32> to vector<8x32xf32>
    %32 = arith.mulf %29, %19 : vector<8x32xf32>
    %33 = arith.mulf %28, %31 : vector<8x32xf32>
    %34 = arith.addf %32, %33 : vector<8x32xf32>
    %35 = math.tanh %34 : vector<8x32xf32>
    %36 = arith.mulf %30, %35 : vector<8x32xf32>
    %37 = vector.shape_cast %36 : vector<8x32xf32> to vector<8x1x32xf32>
    %38 = vector.broadcast %37 : vector<8x1x32xf32> to vector<8x8x32xf32>
    %39 = arith.mulf %15, %38 : vector<8x8x32xf32>
    %cst_27 = arith.constant dense<0.000000e+00> : vector<8x8xf32>
    %40 = vector.multi_reduction <add>, %39, %cst_27 [2] : vector<8x8x32xf32> to vector<8x8xf32>
    %41 = arith.addf %40, %1 : vector<8x8xf32>
    %cst_28 = arith.constant dense<0xFF800000> : vector<8xf32>
    %42 = vector.multi_reduction <maximumf>, %41, %cst_28 [1] : vector<8x8xf32> to vector<8xf32>
    %43 = vector.shape_cast %42 : vector<8xf32> to vector<8x1xf32>
    %44 = vector.broadcast %43 : vector<8x1xf32> to vector<8x8xf32>
    %45 = arith.subf %41, %44 : vector<8x8xf32>
    %46 = math.exp %45 : vector<8x8xf32>
    %cst_29 = arith.constant dense<0.000000e+00> : vector<8xf32>
    %47 = vector.multi_reduction <add>, %46, %cst_29 [1] : vector<8x8xf32> to vector<8xf32>
    %48 = vector.shape_cast %47 : vector<8xf32> to vector<8x1xf32>
    %49 = tpu.reciprocal %48 {approx = true} : vector<8x1xf32> -> vector<8x1xf32>
    %50 = vector.broadcast %49 : vector<8x1xf32> to vector<8x8xf32>
    %51 = arith.mulf %46, %50 : vector<8x8xf32>
    %52 = vector.shape_cast %51 : vector<8x8xf32> to vector<8x8x1xf32>
    %53 = vector.broadcast %52 : vector<8x8x1xf32> to vector<8x8x32xf32>
    %54 = arith.mulf %53, %0 : vector<8x8x32xf32>
    %cst_30 = arith.constant dense<0.000000e+00> : vector<8x32xf32>
    %55 = vector.multi_reduction <add>, %54, %cst_30 [1] : vector<8x8x32xf32> to vector<8x32xf32>
    %cst_31 = arith.constant dense<0.000000e+00> : vector<8x32xf32>
    %56 = tpu.matmul %55, %3, %cst_31 {dimension_numbers = #tpu.dot_dimension_numbers<[1], [0], [0], [1], [0, 0, 1, 1], [], []>} : vector<8x32xf32>, vector<32x32xf32>, vector<8x32xf32> -> vector<8x32xf32>
    %cst_32 = arith.constant dense<0.000000e+00> : vector<8x32xf32>
    %57 = tpu.matmul %36, %4, %cst_32 {dimension_numbers = #tpu.dot_dimension_numbers<[1], [0], [0], [1], [0, 0, 1, 1], [], []>} : vector<8x32xf32>, vector<32x32xf32>, vector<8x32xf32> -> vector<8x32xf32>
    %58 = arith.addf %56, %57 : vector<8x32xf32>
    %59 = math.tanh %58 : vector<8x32xf32>
    %c0_33 = arith.constant 0 : index
    %c0_34 = arith.constant 0 : index
    %60 = vector.load %arg11[%c0_33, %c0_34] : memref<8x8xf32, #tpu.memory_space<vmem>>, vector<8x8xf32>
    tpu.vector_store %arg11[%c0_33, %c0_34], %51 {strides = array<i32>} : memref<8x8xf32, #tpu.memory_space<vmem>>, vector<8x8xf32>,
    %c0_35 = arith.constant 0 : index
    %c0_36 = arith.constant 0 : index
    %61 = vector.load %arg12[%c0_35, %c0_36] : memref<8x32xf32, #tpu.memory_space<vmem>>, vector<8x32xf32>
    tpu.vector_store %arg12[%c0_35, %c0_36], %59 {strides = array<i32>} : memref<8x32xf32, #tpu.memory_space<vmem>>, vector<8x32xf32>,
    %c0_37 = arith.constant 0 : index
    %c0_38 = arith.constant 0 : index
    %c0_39 = arith.constant 0 : index
    %62 = vector.load %arg10[%c0_37, %c0_38, %c0_39] : memref<2x8x32xf32, #tpu.memory_space<vmem>>, vector<1x8x32xf32>
    %63 = vector.shape_cast %62 : vector<1x8x32xf32> to vector<8x32xf32>
    %64 = vector.shape_cast %36 : vector<8x32xf32> to vector<1x8x32xf32>
    tpu.vector_store %arg10[%c0_37, %c0_38, %c0_39], %64 {strides = array<i32>} : memref<2x8x32xf32, #tpu.memory_space<vmem>>, vector<1x8x32xf32>,
    %c1_40 = arith.constant 1 : index
    %c0_41 = arith.constant 0 : index
    %c0_42 = arith.constant 0 : index
    %65 = vector.load %arg10[%c1_40, %c0_41, %c0_42] : memref<2x8x32xf32, #tpu.memory_space<vmem>>, vector<1x8x32xf32>
    %66 = vector.shape_cast %65 : vector<1x8x32xf32> to vector<8x32xf32>
    %67 = vector.shape_cast %34 : vector<8x32xf32> to vector<1x8x32xf32>
    tpu.vector_store %arg10[%c1_40, %c0_41, %c0_42], %67 {strides = array<i32>} : memref<2x8x32xf32, #tpu.memory_space<vmem>>, vector<1x8x32xf32>,
    return
  }
}

</mosaic_0001>

<bundles_post_ra>
// kernel: tpu_custom_call.1
= control target key start
LH: loop header
LB: loop body
LE: loop exit
PB: predicated region body
PF: predicated region fallthrough
CT: control target
= control target key end

     0   :  { %18 = vsyncpa [#allocation3], 0  ;;  %s2204_s0 = inlined_call_operand.hbm [shape: f32[1,8,64], index: 0, kind: input, shape index: {}]   ;;  %s2205_s1 = inlined_call_operand.hbm [shape: f32[2,8,32], index: 1, kind: input, shape index: {}]   ;;  %s2206_s2 = inlined_call_operand.hbm [shape: f32[8,8,32], index: 2, kind: input, shape index: {}]   ;;  %s2207_s3 = inlined_call_operand.hbm [shape: f32[8,8], index: 3, kind: input, shape index: {}]   ;;  %s2208_s4 = inlined_call_operand.hbm [shape: f32[64,128], index: 4, kind: input, shape index: {}]   ;;  %s2209_s5 = inlined_call_operand.hbm [shape: f32[32,128], index: 5, kind: input, shape index: {}]   ;;  %s2210_s6 = inlined_call_operand.vmem [shape: f32[1,128], index: 6, kind: input, shape index: {}]   ;;  %s2211_s7 = inlined_call_operand.hbm [shape: f32[32,32], index: 7, kind: input, shape index: {}]   ;;  %s2212_s8 = inlined_call_operand.hbm [shape: f32[32,32], index: 8, kind: input, shape index: {}]   ;;  %s2213_s9 = inlined_call_operand.hbm [shape: f32[32,32], index: 9, kind: input, shape index: {}]   ;;  %s2214_s10 = inlined_call_operand.hbm [shape: f32[2,8,32], index: 10, kind: output, shape index: {0}]   ;;  %s2215_s11 = inlined_call_operand.hbm [shape: f32[8,8], index: 11, kind: output, shape index: {1}]   ;;  %s2216_s12 = inlined_call_operand.hbm [shape: f32[8,32], index: 12, kind: output, shape index: {2}]  }
   0x1   :  { %19 = vsyncpa [#allocation6], 0 }
   0x2   :  { %20 = vsyncpa [#allocation9], 0 }
   0x3   :  { %21 = vsyncpa [#allocation12], 0 }
   0x4   :  { %22 = vsyncpa [#allocation15], 0 }
   0x5   :  { %23 = vsyncpa [#allocation4], 0 }
   0x6   :  { %24 = vsyncpa [#allocation19], 0  ;;  %s1785_s21 = smov [#allocation5]  }
   0x7   :  { %s40_s22 = sshll.u32 %s1785_s21, 4  ;;  %s41_s22 = int_to_ptr.vmem [resolvable:$true] %s40_s22 }
   0x8   :  { %s1539_s23 = scalar_lea.vmem %s41_s22, 256  ;;  %p1544_p1 = scmp.lt.s32.totalorder %s41_s22, %s41_s22 }
   0x9   :  { %p1540_p0 = scmp.ne.s32.totalorder %s41_s22, %s1539_s23  ;;  %p1545_p2 = scmp.lt.s32.totalorder %s1539_s23, %s1539_s23 }
   0xb   :  { %p1546_p3 = por %p1545_p2, %p1544_p1 }
   0xd   :  { %p1547_p4 = pnand %p1546_p3, %p1540_p0 }
   0xf   :  { %1550 = shalt.err (!%p1547_p4)
}
  0x10   :  { %s1786_s24 = smov 128   ;;  %s1787_s25 = smov 8  }
  0x11   :  { %46 = dma.hbm_to_vmem [thread:$0]  %s2205_s1, 256, %s41_s22, [#allocation6], %s1786_s24, %s1786_s24, %s1787_s25  }
  0x12   :  { %s1788_s28 = smov [#allocation8]   ;;  %s1789_s30 = smov [#allocation11]  }
  0x13   :  { %s65_s29 = sshll.u32 %s1788_s28, 4  ;;  %s86_s13 = sshll.u32 %s1789_s30, 4  ;;  %s66_s29 = int_to_ptr.vmem [resolvable:$true] %s65_s29  ;;  %s87_s13 = int_to_ptr.vmem [resolvable:$true] %s86_s13 }
  0x14   :  { %s1559_s14 = scalar_lea.vmem %s66_s29, 128  ;;  %p1564_p6 = scmp.lt.s32.totalorder %s66_s29, %s66_s29 }
  0x15   :  { %p1560_p5 = scmp.ne.s32.totalorder %s66_s29, %s1559_s14  ;;  %p1565_p7 = scmp.lt.s32.totalorder %s1559_s14, %s1559_s14 }
  0x17   :  { %p1566_p8 = por %p1565_p7, %p1564_p6 }
  0x19   :  { %p1567_p9 = pnand %p1566_p8, %p1560_p5 }
  0x1b   :  { %1570 = shalt.err (!%p1567_p9)
}
  0x1c   :  { %68 = dma.hbm_to_vmem [thread:$0]  %s2207_s3, 128, %s66_s29, [#allocation9]  }
  0x1d   :  { %s1579_s17 = scalar_lea.vmem %s87_s13, 512  ;;  %p1584_p11 = scmp.lt.s32.totalorder %s87_s13, %s87_s13 }
  0x1e   :  { %p1580_p10 = scmp.ne.s32.totalorder %s87_s13, %s1579_s17  ;;  %p1585_p12 = scmp.lt.s32.totalorder %s1579_s17, %s1579_s17 }
  0x20   :  { %p1586_p13 = por %p1585_p12, %p1584_p11 }
  0x22   :  { %p1587_p0 = pnand %p1586_p13, %p1580_p10 }
  0x24   :  { %1590 = shalt.err (!%p1587_p0)
}
  0x25   :  { %92 = dma.hbm_to_vmem [thread:$0]  %s2209_s5, 512, %s87_s13, [#allocation12], %s1786_s24, %s1786_s24, %s1787_s25  }
  0x26   :  { %s1790_s19 = smov [#allocation14]   ;;  %s1791_s21 = smov [#allocation2]  }
  0x27   :  { %s112_s20 = sshll.u32 %s1790_s19, 4  ;;  %s31_s3 = sshll.u32 %s1791_s21, 4  ;;  %s113_s20 = int_to_ptr.vmem [resolvable:$true] %s112_s20  ;;  %s32_s3 = int_to_ptr.vmem [resolvable:$true] %s31_s3 }
  0x28   :  { %s1599_s22 = scalar_lea.vmem %s113_s20, 512  ;;  %p1604_p2 = scmp.lt.s32.totalorder %s113_s20, %s113_s20 }
  0x29   :  { %p1600_p1 = scmp.ne.s32.totalorder %s113_s20, %s1599_s22  ;;  %p1605_p3 = scmp.lt.s32.totalorder %s1599_s22, %s1599_s22 }
  0x2b   :  { %p1606_p4 = por %p1605_p3, %p1604_p2 }
  0x2d   :  { %p1607_p5 = pnand %p1606_p4, %p1600_p1 }
  0x2f   :  { %1610 = shalt.err (!%p1607_p5)
}
  0x30   :  { %118 = dma.hbm_to_vmem [thread:$0]  %s2212_s8, 512, %s113_s20, [#allocation15], %s1786_s24, %s1786_s24, %s1787_s25  }
  0x31   :  { %s1619_s5 = scalar_lea.vmem %s32_s3, 128  ;;  %p1624_p7 = scmp.lt.s32.totalorder %s32_s3, %s32_s3 }
  0x32   :  { %p1620_p6 = scmp.ne.s32.totalorder %s32_s3, %s1619_s5  ;;  %p1625_p8 = scmp.lt.s32.totalorder %s1619_s5, %s1619_s5 }
  0x34   :  { %p1626_p9 = por %p1625_p8, %p1624_p7 }
  0x36   :  { %p1627_p10 = pnand %p1626_p9, %p1620_p6 }
  0x38   :  { %1630 = shalt.err (!%p1627_p10)
}
  0x39   :  { %34 = dma.hbm_to_vmem [thread:$0]  %s2204_s0, 128, %s32_s3, [#allocation3]  }
  0x3a   :  { %s1792_s29 = smov [#allocation7]   ;;  %s1793_s13 = smov [#allocation10]  }
  0x3b   :  { %s52_s30 = sshll.u32 %s1792_s29, 4  ;;  %s74_s14 = sshll.u32 %s1793_s13, 4  ;;  %s53_s30 = int_to_ptr.vmem [resolvable:$true] %s52_s30  ;;  %s75_s14 = int_to_ptr.vmem [resolvable:$true] %s74_s14 }
  0x3c   :  { %s1639_s15 = scalar_lea.vmem %s53_s30, 1024  ;;  %p1644_p12 = scmp.lt.s32.totalorder %s53_s30, %s53_s30 }
  0x3d   :  { %p1640_p11 = scmp.ne.s32.totalorder %s53_s30, %s1639_s15  ;;  %p1645_p13 = scmp.lt.s32.totalorder %s1639_s15, %s1639_s15 }
  0x3f   :  { %p1646_p0 = por %p1645_p13, %p1644_p12 }
  0x41   :  { %p1647_p1 = pnand %p1646_p0, %p1640_p11 }
  0x43   :  { %1650 = shalt.err (!%p1647_p1)
}
  0x44   :  { %58 = dma.hbm_to_vmem [thread:$0]  %s2206_s2, 1024, %s53_s30, [#allocation6], %s1786_s24, %s1786_s24, %s1787_s25  }
  0x45   :  { %s1659_s0 = scalar_lea.vmem %s75_s14, 1024  ;;  %p1664_p3 = scmp.lt.s32.totalorder %s75_s14, %s75_s14 }
  0x46   :  { %p1660_p2 = scmp.ne.s32.totalorder %s75_s14, %s1659_s0  ;;  %p1665_p4 = scmp.lt.s32.totalorder %s1659_s0, %s1659_s0 }
  0x48   :  { %p1666_p5 = por %p1665_p4, %p1664_p3 }
  0x4a   :  { %p1667_p6 = pnand %p1666_p5, %p1660_p2 }
  0x4c   :  { %1670 = shalt.err (!%p1667_p6)
}
  0x4d   :  { %80 = dma.hbm_to_vmem [thread:$0]  %s2208_s4, 1024, %s75_s14, [#allocation9], %s1786_s24, %s1786_s24, %s1787_s25  }
  0x4e   :  { %s1794_s18 = smov [#allocation13]   ;;  %s1795_s20 = smov [#allocation16]  }
  0x4f   :  { %s100_s19 = sshll.u32 %s1794_s18, 4  ;;  %s124_s2 = sshll.u32 %s1795_s20, 4  ;;  %s101_s19 = int_to_ptr.vmem [resolvable:$true] %s100_s19  ;;  %s125_s2 = int_to_ptr.vmem [resolvable:$true] %s124_s2 }
  0x50   :  { %s1679_s21 = scalar_lea.vmem %s101_s19, 512  ;;  %p1684_p8 = scmp.lt.s32.totalorder %s101_s19, %s101_s19 }
  0x51   :  { %p1680_p7 = scmp.ne.s32.totalorder %s101_s19, %s1679_s21  ;;  %p1685_p9 = scmp.lt.s32.totalorder %s1679_s21, %s1679_s21 }
  0x53   :  { %p1686_p10 = por %p1685_p9, %p1684_p8 }
  0x55   :  { %p1687_p11 = pnand %p1686_p10, %p1680_p7 }
  0x57   :  { %1690 = shalt.err (!%p1687_p11)
}
  0x58   :  { %106 = dma.hbm_to_vmem [thread:$0]  %s2211_s7, 512, %s101_s19, [#allocation12], %s1786_s24, %s1786_s24, %s1787_s25  }
  0x59   :  { %s1699_s4 = scalar_lea.vmem %s125_s2, 512  ;;  %p1704_p13 = scmp.lt.s32.totalorder %s125_s2, %s125_s2 }
  0x5a   :  { %p1700_p12 = scmp.ne.s32.totalorder %s125_s2, %s1699_s4  ;;  %p1705_p0 = scmp.lt.s32.totalorder %s1699_s4, %s1699_s4 }
  0x5c   :  { %p1706_p1 = por %p1705_p0, %p1704_p13 }
  0x5e   :  { %p1707_p2 = pnand %p1706_p1, %p1700_p12 }
  0x60   :  { %1710 = shalt.err (!%p1707_p2)
}
  0x61   :  { %130 = dma.hbm_to_vmem [thread:$0]  %s2213_s9, 512, %s125_s2, [#allocation15], %s1786_s24, %s1786_s24, %s1787_s25  }
  0x62   :  { %1771 = dma.done.wait [#allocation3], 128  }
  0x63   :  { %1772 = vsyncadd [#allocation3], 4294967168 }
  0x64   :  { %1773 = dma.done.wait [#allocation6], 1280  }
  0x65   :  { %1774 = vsyncadd [#allocation6], 4294966016 }
  0x66   :  { %1775 = dma.done.wait [#allocation9], 1152  }
  0x67   :  { %1776 = vsyncadd [#allocation9], 4294966144 }
  0x68   :  { %1777 = dma.done.wait [#allocation12], 1024  }
  0x69   :  { %1778 = vsyncadd [#allocation12], 4294966272 }
  0x6a   :  { %1779 = dma.done.wait [#allocation15], 1024  }
  0x6b   :  { %1780 = vsyncadd [#allocation15], 4294966272  ;;  %v1796_v0 = vmov 0.0   ;;  %vm1797_vm0 = vmmov 0   ;;  %v187_v1 = vld [vmem:[#allocation10 + $0x38] sm:$0xff]  ;;  %v186_v2 = vld [vmem:[#allocation10 + $0x30] sm:$0xff]  ;;  %v513_v43 = vlaneseq }
  0x6c   :  { %1408 = vmatprep.subr.mxu0 %v1796_v0  ;;  %1424 = vmatprep.mubr.msk.f32.mxu0 %vm1797_vm0, %v1796_v0  ;;  %v185_v3 = vld [vmem:[#allocation10 + $0x28] sm:$0xff]  ;;  %v184_v4 = vld [vmem:[#allocation10 + $0x20] sm:$0xff]  ;;  %v183_v5 = vld [vmem:[#allocation10 + $0x18] sm:$0xff]  ;;  %vm195_vm1 = vcmask 523264   ;;  %vm273_vm2 = vcmask 261120   ;;  %s1798_s5 = smov 64  }
  0x6d   :  { %1409 = vmatpush3.msra.mxu0 %v187_v1  ;;  %v182_v6 = vld [vmem:[#allocation10 + $0x10] sm:$0xff]  ;;  %v181_v7 = vld [vmem:[#allocation10 + $0x8] sm:$0xff]  ;;  %v180_v8 = vld [vmem:[#allocation10] sm:$0xff]  ;;  %s1799_s27 = smov 32   ;;  %v1981_v46 = vshrl.u32 %v513_v43, 7  ;;  %vm785_vm3 = vcmask 1041409  }
  0x6e   :  { %1410 = vmatprep.subr.mxu0 %v1796_v0  ;;  %v179_v9 = vld [vmem:[#allocation2] sm:$0xff]  ;;  %v170_v10 = vld [vmem:[#allocation11 + $0x18] sm:$0xff]  ;;  %v169_v11 = vld [vmem:[#allocation11 + $0x10] sm:$0xff]  ;;  %v1800_v54 = vmov 1966171168   ;;  %vm787_vm4 = vcmask 1042434  }
  0x6f   :  { %1411 = vmatpush3.msra.mxu0 %v186_v2  ;;  %v168_v12 = vld [vmem:[#allocation11 + $0x8] sm:$0xff]  ;;  %v167_v13 = vld [vmem:[#allocation11] sm:$0xff]  ;;  %v405_v23 = vld [vmem:[#allocation5 + $0x8] sm:$0xff]  ;;  %v1987_v48 = vsub.s32 1, %v1981_v46  ;;  %v1994_v51 = vsub.s32 0, %v1981_v46  ;;  %v511_v55 = vunpack.c.l.s4 %v1800_v54  ;;  %vm789_vm5 = vcmask 1043459  }
  0x70   :  { %1412 = vmatprep.subr.mxu0 %v1796_v0  ;;  %v403_v14 = vld [vmem:[#allocation5] sm:$0xff]  ;;  %v1358_v17 = vld [vmem:[%s2210_s6] ss:$0 sm:$0xff]  ;;  %v272_v30 = vld [vmem:[#allocation13 + $0x18] sm:$0xff]  ;;  %vm791_vm6 = vcmask 1044484   ;;  %vm793_vm7 = vcmask 1045509  }
  0x71   :  { %1413 = vmatpush3.msra.mxu0 %v185_v3  ;;  %v271_v31 = vld [vmem:[#allocation13 + $0x10] sm:$0xff]  ;;  %1427 = vmatprep.subr.mxu1 %v272_v30  ;;  %v1945_v32 = vld [vmem:[#allocation7] sm:$0xff]  ;;  %v270_v33 = vld [vmem:[#allocation13 + $0x8] sm:$0xff]  ;;  %v512_v56 = vunpack.c.0.s8 %v511_v55  ;;  %vm795_vm8 = vcmask 1046534   ;;  %vm797_vm9 = vcmask 1047559   ;;  %vm800_vm10 = vcmask 64512  }
  0x72   :  { %1414 = vmatprep.subr.mxu0 %v1796_v0  ;;  %1428 = vmatpush3.msra.mxu1 %v272_v30  ;;  %v269_v34 = vld [vmem:[#allocation13] sm:$0xff]  ;;  %v1951_v36 = vld [vmem:[#allocation7 + $0x10] sm:$0xff]  ;;  %v1958_v37 = vld [vmem:[#allocation7 + $0x18] sm:$0xff]  ;;  %s1802_s6 = smov 96   ;;  %s1803_s28 = smov [#allocation18]  }
  0x73   :  { %1415 = vmatpush3.msra.mxu0 %v184_v4  ;;  %1435 = vmatprep.mubr.msk.f32.mxu1 %vm273_vm2, %v1945_v32  ;;  %v1949_v35 = vld [vmem:[#allocation7 + $0x8] sm:$0xff]  ;;  %v1960_v38 = vld [vmem:[#allocation7 + $0x20] sm:$0xff]  ;;  %v1968_v40 = vld [vmem:[#allocation7 + $0x30] sm:$0xff]  ;;  %v515_v57 = vsub.s32 %v512_v56, %v1981_v46  ;;  %s1328_s29 = sshll.u32 %s1803_s28, 4  ;;  %s1804_s30 = smov [#allocation17]   ;;  %s1329_s29 = int_to_ptr.vmem [resolvable:$true] %s1328_s29 }
  0x74   :  { %1416 = vmatprep.subr.mxu0 %v1796_v0  ;;  %1429 = vmatprep.subr.mxu1 %v271_v31  ;;  %v1966_v39 = vld [vmem:[#allocation7 + $0x28] sm:$0xff]  ;;  %v1974_v41 = vld [vmem:[#allocation7 + $0x38] sm:$0xff]  ;;  %v1989_v49 = vld [vmem:[#allocation8] sm:$0xff]  ;;  %s1315_s13 = sshll.u32 %s1804_s30, 4  ;;  %s1711_s14 = scalar_lea.vmem %s1329_s29, 128  ;;  %s1316_s13 = int_to_ptr.vmem [resolvable:$true] %s1315_s13 }
  0x75   :  { %1417 = vmatpush3.msra.mxu0 %v183_v5  ;;  %1430 = vmatpush3.msra.mxu1 %v271_v31  ;;  %v657_v50 = vrot.slane %v1989_v49, %v1987_v48  ;;  %v650_v53 = vrot.slane %v1989_v49, %v1994_v51  ;;  %p1712_p3 = scmp.ne.s32.totalorder %s1329_s29, %s1711_s14  ;;  %p1716_p4 = scmp.lt.s32.totalorder %s1329_s29, %s1329_s29 }
  0x76   :  { %1418 = vmatprep.subr.mxu0 %v1796_v0  ;;  %1431 = vmatprep.subr.mxu1 %v270_v33  ;;  %p1717_p5 = scmp.lt.s32.totalorder %s1711_s14, %s1711_s14 }
  0x77   :  { %1419 = vmatpush3.msra.mxu0 %v182_v6  ;;  %1432 = vmatpush3.msra.mxu1 %v270_v33 }
  0x78   :  { %1420 = vmatprep.subr.mxu0 %v1796_v0  ;;  %1433 = vmatprep.subr.mxu1 %v269_v34  ;;  %p1718_p6 = por %p1717_p5, %p1716_p4 }
  0x79   :  { %1421 = vmatpush3.msra.mxu0 %v181_v7  ;;  %1434 = vmatpush3.msra.mxu1 %v269_v34 }
  0x7a   :  { %1422 = vmatprep.subr.mxu0 %v1796_v0  ;;  %1436 = vmatmul.mubr.msk.f32.vlgmr.msra.gmra.mxu1 %vm273_vm2, %v1949_v35  ;;  %p1719_p7 = pnand %p1718_p6, %p1712_p3 }
  0x7b   :  { %1423 = vmatpush3.msra.mxu0 %v180_v8  ;;  %1458 = vmatprep.subr.mxu1 %v1796_v0 }
  0x7c   :  { %1425 = vmatmul.mubr.msk.f32.vlgmr.msra.gmra.mxu0 %vm195_vm1, %v179_v9  ;;  %1447 = vmatprep.subr.mxu0 %v1796_v0 }
  0x7d   :  { %1448 = vmatpush3.msra.mxu0 %v170_v10  ;;  %1455 = vmatprep.mubr.msk.f32.mxu0 %vm1797_vm0, %v1796_v0 }
  0x7e   :  { %1449 = vmatprep.subr.mxu0 %v1796_v0  ;;  %1438 = vmatprep.mubr.msk.f32.mxu1 %vm273_vm2, %v1951_v36 }
  0x7f   :  { %1450 = vmatpush3.msra.mxu0 %v169_v11  ;;  %1439 = vmatmul.mubr.msk.f32.gmra.mxu1 %vm273_vm2, %v1958_v37 }
  0x80   :  { %1451 = vmatprep.subr.mxu0 %v1796_v0  ;;  %1441 = vmatprep.mubr.msk.f32.mxu1 %vm273_vm2, %v1960_v38 }
  0x81   :  { %1452 = vmatpush3.msra.mxu0 %v168_v12 }
  0x82   :  { %1453 = vmatprep.subr.mxu0 %v1796_v0 }
  0x83   :  { %1454 = vmatpush3.msra.mxu0 %v167_v13  ;;  %1442 = vmatmul.mubr.msk.f32.gmra.mxu1 %vm273_vm2, %v1966_v39 }
  0x84   :  { %1456 = vmatmul.mubr.msk.f32.vlgmr.msra.gmra.mxu0 %vm273_vm2, %v403_v14  ;;  %1469 = vmatprep.subr.mxu0 %v1796_v0 }
  0x85   :  { %1477 = vmatprep.mubr.msk.f32.mxu0 %vm1797_vm0, %v1796_v0  ;;  %1444 = vmatprep.mubr.msk.f32.mxu1 %vm273_vm2, %v1968_v40 }
  0x87   :  { %1445 = vmatmul.mubr.msk.f32.gmra.mxu1 %vm273_vm2, %v1974_v41 }
  0x88   :  { %1466 = vmatprep.mubr.msk.f32.mxu1 %vm1797_vm0, %v1796_v0 }
 0x13c   :  { %v265_v15 = vpop.f32.mrf.mxu0 }
 0x13d   :  { %v266_v18 = vadd.f32 %v1358_v17, %v265_v15 }
 0x13e   :  { %v1426_v16 = vpop.f32.mrf.mxu0 }
 0x13f   :  { %v2017_v16 = vsub.s32 4, %v1981_v46 }
 0x144   :  { %v475_v19 = vpop.f32.mrf.mxu0 }
 0x145   :  { %v479_v20 = vadd.f32 %v475_v19, %v266_v18  ;;  %v2022_v18 = vsub.s32 2, %v1981_v46 }
 0x146   :  { %v1457_v21 = vpop.f32.mrf.mxu0 }
 0x147   :  { %1503 = vtanh.f32 %v479_v20  ;;  %v1369_v24 = vmul.f32 -1.442695, %v479_v20  ;;  %v678_v20 = vrot.slane %v1989_v49, %v2017_v16  ;;  %v664_v21 = vrot.slane %v1989_v49, %v2022_v18 }
 0x149   :  { %1505 = vpow2.f32 %v1369_v24  ;;  %v2037_v24 = vsub.s32 5, %v1981_v46 }
 0x154   :  { %v1504_v22 = vpop.eup %1503 }
 0x155   :  { %493 = vrot.lane.b32.xlu0 %v1504_v22, %s1798_s5  ;;  %v2032_v22 = vsub.s32 3, %v1981_v46 }
 0x156   :  { %v1506_v25 = vpop.eup %1505 }
 0x157   :  { %v483_v26 = vadd.f32 1.0, %v1506_v25  ;;  %v685_v25 = vrot.slane %v1989_v49, %v2037_v24 }
 0x159   :  { %488 = vrot.lane.b32.xlu0 %v405_v23, %s1799_s27  ;;  %1507 = vrcp.f32 %v483_v26  ;;  %v671_v23 = vrot.slane %v1989_v49, %v2032_v22  ;;  %v1437_v26 = vpop.f32.mrf.mxu1 }
 0x15d   :  { %659 = vbcast.lane.b32.xlu0 %v657_v50, 256 }
 0x166   :  { %v1508_v27 = vpop.eup %1507 }
 0x1c7   :  { %v494_v28 = vpop.permute.xlu0 %493 }
 0x1c8   :  { %v496_v29 = vmul.f32 %v1508_v27, %v494_v28 }
 0x1ca   :  { %498 = vrot.lane.b32.xlu1 %v496_v29, %s1799_s27 }
 0x1cb   :  { %v489_v42 = vpop.permute.xlu0 %488 }
 0x1cc   :  { %v491_v44 = vmul.f32 %v1508_v27, %v489_v42 }
 0x1cf   :  { %v660_v29 = vpop.permute.xlu0 %659 }
 0x23c   :  { %v499_v45 = vpop.permute.xlu1 %498 }
 0x23d   :  { %v1983_v47 = vadd.f32 %v499_v45, %v491_v44 }
 0x23f   :  { %1509 = vtanh.f32 %v1983_v47 }
 0x24c   :  { %v1510_v52 = vpop.eup %1509 }
 0x24d   :  { %504 = vrot.lane.b32.xlu1 %v1510_v52, %s1798_s5 }
 0x251   :  { %652 = vbcast.lane.b32.xlu1 %v650_v53, 256 }
 0x2bf   :  { %v505_v58 = vpop.permute.xlu1 %504 }
 0x2c0   :  { %v2000_v59 = vmul.f32 %v1508_v27, %v505_v58  ;;  %v364_v27 = vpop.f32.mrf.mxu1 }
 0x2c2   :  { %v509_v60 = vcombine.high %v2000_v59, %v2000_v59  ;;  %v516_v61 = vrot.slane %v2000_v59, %v515_v57  ;;  %v1440_v28 = vpop.f32.mrf.mxu1 }
 0x2c3   :  { %v653_v30 = vpop.permute.xlu1 %652 }
 0x2c4   :  { %v523_v62 = vrot.slane %v509_v60, %v515_v57  ;;  %v524_v63 = vcombine.high %v516_v61, %v516_v61  ;;  %v532_v1 = vrot.slane %v516_v61, %v515_v57  ;;  %v374_v31 = vpop.f32.mrf.mxu1 }
 0x2c6   :  { %v561_v2 = vrot.slane %v532_v1, %v1994_v51  ;;  %v546_v3 = vrot.slane %v524_v63, %v515_v57  ;;  %v554_v4 = vcombine.high %v532_v1, %v532_v1  ;;  %v525_v7 = vcombine.high %v523_v62, %v523_v62  ;;  %v1443_v33 = vpop.f32.mrf.mxu1 }
 0x2c7   :  { %v539_v9 = vrot.slane %v523_v62, %v515_v57 }
 0x2c8   :  { %590 = vrot.lane.b32.xlu0 %v561_v2, %s1799_s27  ;;  %v565_v5 = vrot.slane %v546_v3, %v1994_v51  ;;  %v556_v6 = vcombine.high %v546_v3, %v546_v3  ;;  %v569_v8 = vrot.slane %v554_v4, %v1994_v51  ;;  %v553_v11 = vrot.slane %v525_v7, %v515_v57  ;;  %v384_v45 = vpop.f32.mrf.mxu1 }
 0x2c9   :  { %v577_v12 = vrot.slane %v539_v9, %v1994_v51  ;;  %v555_v13 = vcombine.high %v539_v9, %v539_v9 }
 0x2ca   :  { %592 = vrot.lane.b32.xlu1 %v565_v5, %s1799_s27  ;;  %v573_v10 = vrot.slane %v556_v6, %v1994_v51  ;;  %v581_v14 = vrot.slane %v553_v11, %v1994_v51  ;;  %v557_v15 = vcombine.high %v553_v11, %v553_v11  ;;  %v1446_v57 = vpop.f32.mrf.mxu1  ;;  %v1801_v11 = vmov 0  }
 0x2cb   :  { %v585_v17 = vrot.slane %v555_v13, %v1994_v51  ;;  %1501 = vset.pattern.permute.xlu0 %v1801_v11  ;;  %1502 = vset.pattern.permute.xlu1 %v1801_v11  ;;  %v2050_v13 = vsub.s32 7, %v1981_v46 }
 0x2cc   :  { %594 = vrot.lane.b32.xlu0 %v569_v8, %s1799_s27  ;;  %v589_v19 = vrot.slane %v557_v15, %v1994_v51  ;;  %v394_v1 = vpop.f32.mrf.mxu1  ;;  %v2055_v15 = vsub.s32 6, %v1981_v46 }
 0x2ce   :  { %596 = vrot.lane.b32.xlu1 %v573_v10, %s1799_s27 }
 0x2d0   :  { %598 = vrot.lane.b32.xlu0 %v577_v12, %s1799_s27 }
 0x2d2   :  { %600 = vrot.lane.b32.xlu1 %v581_v14, %s1799_s27  ;;  %v699_v14 = vrot.slane %v1989_v49, %v2050_v13 }
 0x2d4   :  { %602 = vrot.lane.b32.xlu0 %v585_v17, %s1799_s27  ;;  %v692_v17 = vrot.slane %v1989_v49, %v2055_v15 }
 0x2d6   :  { %604 = vrot.lane.b32.xlu1 %v589_v19, %s1799_s27 }
 0x2d8   :  { %680 = vbcast.lane.b32.xlu0 %v678_v20, 256 }
 0x2da   :  { %666 = vbcast.lane.b32.xlu1 %v664_v21, 256 }
 0x2de   :  { %673 = vbcast.lane.b32.xlu1 %v671_v23, 256 }
 0x2e2   :  { %687 = vbcast.lane.b32.xlu1 %v685_v25, 256 }
 0x33a   :  { %v591_v34 = vpop.permute.xlu0 %590 }
 0x33b   :  { %v614_v42 = vmul.f32 %v591_v34, %v364_v27 }
 0x33c   :  { %v593_v44 = vpop.permute.xlu1 %592 }
 0x33d   :  { %v615_v50 = vmul.f32 %v1437_v26, %v593_v44  ;;  %v622_v52 = vsel %vm273_vm2, %v614_v42, 0.0 }
 0x33e   :  { %v595_v53 = vpop.permute.xlu0 %594  ;;  %623 = vadd.xlane.f32.xlu0 %v622_v52 }
 0x33f   :  { %v616_v54 = vmul.f32 %v595_v53, %v374_v31  ;;  %v625_v55 = vsel %vm273_vm2, %v615_v50, 0.0 }
 0x340   :  { %v597_v56 = vpop.permute.xlu1 %596  ;;  %626 = vadd.xlane.f32.xlu1 %v625_v55 }
 0x341   :  { %v617_v58 = vmul.f32 %v1440_v28, %v597_v56  ;;  %v628_v60 = vsel %vm273_vm2, %v616_v54, 0.0  ;;  %v752_v56 = vand.u32 127, %v513_v43 }
 0x342   :  { %v599_v61 = vpop.permute.xlu0 %598  ;;  %629 = vadd.xlane.f32.xlu0 %v628_v60 }
 0x343   :  { %v618_v62 = vmul.f32 %v599_v61, %v384_v45  ;;  %v631_v3 = vsel %vm273_vm2, %v617_v58, 0.0  ;;  %v2082_v60 = vsub.s32 %v752_v56, %v1981_v46 }
 0x344   :  { %v601_v63 = vpop.permute.xlu1 %600 }
 0x345   :  { %v619_v2 = vmul.f32 %v1443_v33, %v601_v63  ;;  %v634_v4 = vsel %vm273_vm2, %v618_v62, 0.0 }
 0x346   :  { %v603_v5 = vpop.permute.xlu0 %602  ;;  %632 = vadd.xlane.f32.xlu0 %v631_v3  ;;  %635 = vadd.xlane.f32.xlu1 %v634_v4 }
 0x347   :  { %v620_v6 = vmul.f32 %v603_v5, %v394_v1  ;;  %v637_v9 = vsel %vm273_vm2, %v619_v2, 0.0 }
 0x348   :  { %v605_v7 = vpop.permute.xlu1 %604 }
 0x349   :  { %v621_v8 = vmul.f32 %v1446_v57, %v605_v7  ;;  %v640_v10 = vsel %vm273_vm2, %v620_v6, 0.0 }
 0x34a   :  { %638 = vadd.xlane.f32.xlu0 %v637_v9  ;;  %641 = vadd.xlane.f32.xlu1 %v640_v10  ;;  %v681_v21 = vpop.permute.xlu0 %680 }
 0x34b   :  { %v643_v12 = vsel %vm273_vm2, %v621_v8, 0.0 }
 0x34c   :  { %v667_v19 = vpop.permute.xlu1 %666 }
 0x34e   :  { %644 = vadd.xlane.f32.xlu0 %v643_v12 }
 0x350   :  { %v674_v20 = vpop.permute.xlu1 %673 }
 0x354   :  { %v688_v23 = vpop.permute.xlu1 %687 }
 0x35b   :  { %701 = vbcast.lane.b32.xlu1 %v699_v14, 256 }
 0x364   :  { %694 = vbcast.lane.b32.xlu0 %v692_v17, 256 }
 0x3c7   :  { %v624_v25 = vpop.xlane.xlu0 %623 }
 0x3c8   :  { %v2059_v26 = vadd.f32 %v653_v30, %v624_v25 }
 0x3c9   :  { %v627_v27 = vpop.xlane.xlu1 %626 }
 0x3ca   :  { %v2061_v28 = vadd.f32 %v660_v29, %v627_v27  ;;  %728 = vperm.xlu0 %1501, %v2059_v26  }
 0x3cb   :  { %v630_v31 = vpop.xlane.xlu0 %629 }
 0x3cc   :  { %731 = vperm.xlu1 %1502, %v2061_v28   ;;  %v713_v33 = vadd.f32 %v667_v19, %v630_v31 }
 0x3cf   :  { %v633_v34 = vpop.xlane.xlu0 %632  ;;  %v636_v42 = vpop.xlane.xlu1 %635 }
 0x3d0   :  { %v2065_v49 = vadd.f32 %v674_v20, %v633_v34  ;;  %734 = vperm.xlu1 %1502, %v713_v33   ;;  %v2067_v44 = vadd.f32 %v681_v21, %v636_v42 }
 0x3d2   :  { %737 = vperm.xlu0 %1501, %v2065_v49  }
 0x3d3   :  { %v639_v30 = vpop.xlane.xlu0 %638  ;;  %v642_v45 = vpop.xlane.xlu1 %641 }
 0x3d4   :  { %v2070_v50 = vadd.f32 %v688_v23, %v639_v30  ;;  %740 = vperm.xlu1 %1502, %v2067_v44  }
 0x3d6   :  { %743 = vperm.xlu0 %1501, %v2070_v50  }
 0x3d7   :  { %v645_v29 = vpop.xlane.xlu0 %644  ;;  %v702_v52 = vpop.permute.xlu1 %701 }
 0x3d8   :  { %v2074_v53 = vadd.f32 %v702_v52, %v645_v29 }
 0x3da   :  { %749 = vperm.xlu0 %1501, %v2074_v53  }
 0x3db   :  { %v695_v54 = vpop.permute.xlu0 %694 }
 0x3dc   :  { %v2077_v55 = vadd.f32 %v695_v54, %v642_v45 }
 0x3de   :  { %746 = vperm.xlu1 %1502, %v2077_v55  }
 0x445   :  { %v729_v58 = vpop.permute.xlu0 %728 }
 0x446   :  { %v756_v2 = vrot.slane %v729_v58, %v2082_v60 }
 0x447   :  { %v732_v57 = vpop.permute.xlu1 %731 }
 0x448   :  { %v760_v62 = vrot.slane %v732_v57, %v2082_v60 }
 0x44a   :  { %v786_v3 = vsel %vm785_vm3, %v760_v62, %v756_v2 }
 0x44b   :  { %v735_v61 = vpop.permute.xlu1 %734 }
 0x44c   :  { %v764_v1 = vrot.slane %v735_v61, %v2082_v60 }
 0x44d   :  { %v738_v63 = vpop.permute.xlu0 %737 }
 0x44e   :  { %v768_v4 = vrot.slane %v738_v63, %v2082_v60  ;;  %v788_v5 = vsel %vm787_vm4, %v764_v1, %v786_v3 }
 0x44f   :  { %v741_v43 = vpop.permute.xlu1 %740 }
 0x450   :  { %v772_v6 = vrot.slane %v741_v43, %v2082_v60  ;;  %v790_v7 = vsel %vm789_vm5, %v768_v4, %v788_v5 }
 0x451   :  { %v744_v46 = vpop.permute.xlu0 %743 }
 0x452   :  { %v776_v8 = vrot.slane %v744_v46, %v2082_v60  ;;  %v792_v9 = vsel %vm791_vm6, %v772_v6, %v790_v7 }
 0x454   :  { %v794_v14 = vsel %vm793_vm7, %v776_v8, %v792_v9 }
 0x455   :  { %v750_v10 = vpop.permute.xlu0 %749 }
 0x456   :  { %v784_v17 = vrot.slane %v750_v10, %v2082_v60 }
 0x459   :  { %v747_v11 = vpop.permute.xlu1 %746 }
 0x45a   :  { %v780_v12 = vrot.slane %v747_v11, %v2082_v60 }
 0x45c   :  { %v796_v19 = vsel %vm795_vm8, %v780_v12, %v794_v14 }
 0x45d   :  { %v798_v20 = vsel %vm797_vm9, %v784_v17, %v796_v19 }
 0x45e   :  { %v801_v21 = vsel %vm800_vm10, %v798_v20, -inf }
 0x45f   :  { %802 = vmax.xlane.f32.xlu1 %v801_v21 }
 0x4e8   :  { %v803_v23 = vpop.xlane.xlu1 %802 }
 0x4e9   :  { %v808_v25 = vrot.slane %v803_v23, %v1994_v51  ;;  %v812_v27 = vrot.slane %v803_v23, %v1987_v48  ;;  %v816_v31 = vrot.slane %v803_v23, %v2022_v18  ;;  %v820_v45 = vrot.slane %v803_v23, %v2032_v22 }
 0x4ea   :  { %v824_v54 = vrot.slane %v803_v23, %v2017_v16  ;;  %v828_v58 = vrot.slane %v803_v23, %v2037_v24  ;;  %v836_v1 = vrot.slane %v803_v23, %v2050_v13 }
 0x4eb   :  { %v845_v34 = vsub.f32 %v2059_v26, %v808_v25  ;;  %v846_v42 = vsub.f32 %v2061_v28, %v812_v27  ;;  %v847_v29 = vsub.f32 %v713_v33, %v816_v31  ;;  %v848_v56 = vsub.f32 %v2065_v49, %v820_v45 }
 0x4ec   :  { %v849_v61 = vsub.f32 %v2067_v44, %v824_v54  ;;  %v832_v28 = vrot.slane %v803_v23, %v2055_v15  ;;  %v850_v62 = vsub.f32 %v2070_v50, %v828_v58  ;;  %v852_v44 = vsub.f32 %v2074_v53, %v836_v1 }
 0x4ed   :  { %v853_v30 = vmul.f32 1.442695, %v845_v34  ;;  %v855_v52 = vmul.f32 1.442695, %v846_v42  ;;  %v857_v57 = vmul.f32 1.442695, %v847_v29 }
 0x4ee   :  { %v859_v26 = vmul.f32 1.442695, %v848_v56  ;;  %v861_v33 = vmul.f32 1.442695, %v849_v61  ;;  %v851_v49 = vsub.f32 %v2077_v55, %v832_v28  ;;  %v863_v2 = vmul.f32 1.442695, %v850_v62 }
 0x4ef   :  { %1511 = vpow2.f32 %v853_v30  ;;  %v867_v50 = vmul.f32 1.442695, %v852_v44 }
 0x4f0   :  { %1513 = vpow2.f32 %v855_v52  ;;  %v865_v4 = vmul.f32 1.442695, %v851_v49 }
 0x4f1   :  { %1515 = vpow2.f32 %v857_v57 }
 0x4f2   :  { %1517 = vpow2.f32 %v859_v26 }
 0x4f3   :  { %1519 = vpow2.f32 %v861_v33 }
 0x4f4   :  { %1521 = vpow2.f32 %v863_v2 }
 0x4f5   :  { %1523 = vpow2.f32 %v865_v4 }
 0x4f6   :  { %1525 = vpow2.f32 %v867_v50 }
 0x4fc   :  { %v1512_v63 = vpop.eup %1511 }
 0x4fd   :  { %878 = vperm.xlu0 %1501, %v1512_v63   ;;  %v1514_v3 = vpop.eup %1513 }
 0x4fe   :  { %v1516_v43 = vpop.eup %1515 }
 0x4ff   :  { %v1518_v5 = vpop.eup %1517 }
 0x500   :  { %v1520_v46 = vpop.eup %1519 }
 0x501   :  { %881 = vperm.xlu0 %1501, %v1514_v3   ;;  %v1522_v6 = vpop.eup %1521 }
 0x502   :  { %v1524_v55 = vpop.eup %1523 }
 0x503   :  { %v1526_v7 = vpop.eup %1525 }
 0x505   :  { %884 = vperm.xlu0 %1501, %v1516_v43  }
 0x509   :  { %887 = vperm.xlu0 %1501, %v1518_v5  }
 0x50d   :  { %890 = vperm.xlu0 %1501, %v1520_v46  }
 0x511   :  { %893 = vperm.xlu0 %1501, %v1522_v6  }
 0x515   :  { %896 = vperm.xlu0 %1501, %v1524_v55  }
 0x519   :  { %899 = vperm.xlu0 %1501, %v1526_v7  }
 0x578   :  { %v879_v8 = vpop.permute.xlu0 %878 }
 0x579   :  { %v904_v19 = vrot.slane %v879_v8, %v2082_v60 }
 0x57c   :  { %v882_v9 = vpop.permute.xlu0 %881 }
 0x57d   :  { %v908_v14 = vrot.slane %v882_v9, %v2082_v60 }
 0x57f   :  { %v933_v25 = vsel %vm785_vm3, %v908_v14, %v904_v19 }
 0x580   :  { %v885_v53 = vpop.permute.xlu0 %884 }
 0x581   :  { %v912_v17 = vrot.slane %v885_v53, %v2082_v60 }
 0x583   :  { %v934_v31 = vsel %vm787_vm4, %v912_v17, %v933_v25 }
 0x584   :  { %v888_v10 = vpop.permute.xlu0 %887 }
 0x585   :  { %v916_v20 = vrot.slane %v888_v10, %v2082_v60 }
 0x587   :  { %v935_v42 = vsel %vm789_vm5, %v916_v20, %v934_v31 }
 0x588   :  { %v891_v11 = vpop.permute.xlu0 %890 }
 0x589   :  { %v920_v21 = vrot.slane %v891_v11, %v2082_v60 }
 0x58b   :  { %v936_v30 = vsel %vm791_vm6, %v920_v21, %v935_v42 }
 0x58c   :  { %v894_v12 = vpop.permute.xlu0 %893 }
 0x58d   :  { %v924_v27 = vrot.slane %v894_v12, %v2082_v60 }
 0x58f   :  { %v937_v29 = vsel %vm793_vm7, %v924_v27, %v936_v30 }
 0x590   :  { %v897_v23 = vpop.permute.xlu0 %896 }
 0x591   :  { %v928_v34 = vrot.slane %v897_v23, %v2082_v60 }
 0x593   :  { %v938_v54 = vsel %vm795_vm8, %v928_v34, %v937_v29 }
 0x594   :  { %v900_v45 = vpop.permute.xlu0 %899 }
 0x595   :  { %v932_v52 = vrot.slane %v900_v45, %v2082_v60 }
 0x597   :  { %v939_v56 = vsel %vm797_vm9, %v932_v52, %v938_v54 }
 0x598   :  { %v941_v57 = vsel %vm800_vm10, %v939_v56, 0.0 }
 0x599   :  { %942 = vadd.xlane.f32.xlu0 %v941_v57 }
 0x622   :  { %v943_v58 = vpop.xlane.xlu0 %942 }
 0x623   :  { %1527 = vrcp.f32 %v943_v58 }
 0x630   :  { %v1528_v61 = vpop.eup %1527 }
 0x631   :  { %v969_v26 = vrot.slane %v1528_v61, %v2037_v24  ;;  %v949_v28 = vrot.slane %v1528_v61, %v1994_v51  ;;  %v953_v1 = vrot.slane %v1528_v61, %v1987_v48  ;;  %v957_v2 = vrot.slane %v1528_v61, %v2022_v18  ;;  %v177_v18 = vld [vmem:[#allocation16 + $0x10] sm:$0xff] }
 0x632   :  { %v961_v4 = vrot.slane %v1528_v61, %v2032_v22  ;;  %v965_v8 = vrot.slane %v1528_v61, %v2017_v16  ;;  %v973_v51 = vrot.slane %v1528_v61, %v2055_v15  ;;  %v977_v48 = vrot.slane %v1528_v61, %v2050_v13  ;;  %v176_v16 = vld [vmem:[#allocation16 + $0x8] sm:$0xff]  ;;  %v175_v22 = vld [vmem:[#allocation16] sm:$0xff]  ;;  %v174_v13 = vld [vmem:[#allocation14 + $0x18] sm:$0xff] }
 0x633   :  { %v991_v62 = vmul.f32 %v1522_v6, %v969_v26  ;;  %v986_v33 = vmul.f32 %v1512_v63, %v949_v28  ;;  %v987_v49 = vmul.f32 %v1514_v3, %v953_v1  ;;  %v988_v44 = vmul.f32 %v1516_v43, %v957_v2  ;;  %v178_v6 = vld [vmem:[#allocation16 + $0x18] sm:$0xff]  ;;  %v173_v15 = vld [vmem:[#allocation14 + $0x10] sm:$0xff]  ;;  %1470 = vmatpush3.msra.mxu0 %v174_v13  ;;  %v172_v43 = vld [vmem:[#allocation14 + $0x8] sm:$0xff] }
 0x634   :  { %v989_v50 = vmul.f32 %v1518_v5, %v961_v4  ;;  %v990_v24 = vmul.f32 %v1520_v46, %v965_v8  ;;  %v992_v63 = vmul.f32 %v1524_v55, %v973_v51  ;;  %v993_v3 = vmul.f32 %v1526_v7, %v977_v48  ;;  %1459 = vmatpush3.msra.mxu1 %v178_v6  ;;  %v171_v5 = vld [vmem:[#allocation14] sm:$0xff] }
 0x635   :  { %1021 = vperm.xlu0 %1501, %v991_v62   ;;  %996 = vperm.xlu1 %1502, %v986_v33  }
 0x636   :  { %1460 = vmatprep.subr.mxu1 %v1796_v0  ;;  %1471 = vmatprep.subr.mxu0 %v1796_v0 }
 0x637   :  { %1461 = vmatpush3.msra.mxu1 %v177_v18  ;;  %1472 = vmatpush3.msra.mxu0 %v173_v15 }
 0x638   :  { %1462 = vmatprep.subr.mxu1 %v1796_v0  ;;  %1473 = vmatprep.subr.mxu0 %v1796_v0 }
 0x639   :  { %1001 = vperm.xlu1 %1502, %v987_v49   ;;  %1463 = vmatpush3.msra.mxu1 %v176_v16 }
 0x63a   :  { %1464 = vmatprep.subr.mxu1 %v1796_v0  ;;  %1474 = vmatpush3.msra.mxu0 %v172_v43 }
 0x63b   :  { %1465 = vmatpush3.msra.mxu1 %v175_v22  ;;  %1475 = vmatprep.subr.mxu0 %v1796_v0 }
 0x63c   :  { %1476 = vmatpush3.msra.mxu0 %v171_v5 }
 0x63d   :  { %1006 = vperm.xlu1 %1502, %v988_v44  }
 0x641   :  { %1011 = vperm.xlu1 %1502, %v989_v50  }
 0x645   :  { %1016 = vperm.xlu1 %1502, %v990_v24  }
 0x649   :  { %1026 = vperm.xlu1 %1502, %v992_v63  }
 0x64d   :  { %1031 = vperm.xlu1 %1502, %v993_v3  }
 0x651   :  { %1098 = vrot.lane.b32.xlu1 %v2000_v59, %s1799_s27 }
 0x655   :  { %1305 = vrot.lane.b32.xlu1 %v1983_v47, %s1802_s6 }
 0x6b0   :  { %v997_v59 = vpop.permute.xlu1 %996  ;;  %v1022_v7 = vpop.permute.xlu0 %1021 }
 0x6b1   :  { %v1034_v46 = vmul.f32 %v997_v59, %v1945_v32  ;;  %v1039_v11 = vmul.f32 %v1022_v7, %v1966_v39  ;;  %v1263_v29 = vrot.slane %v997_v59, %v2082_v60  ;;  %v1283_v48 = vrot.slane %v1022_v7, %v2082_v60 }
 0x6b3   :  { %v1042_v55 = vsel %vm273_vm2, %v1034_v46, 0.0  ;;  %v1077_v32 = vsel %vm273_vm2, %v1039_v11, 0.0 }
 0x6b4   :  { %v1002_v47 = vpop.permute.xlu1 %1001  ;;  %v1043_v53 = vrot.slane %v1042_v55, 4  ;;  %v1078_v27 = vrot.slane %v1077_v32, 4 }
 0x6b5   :  { %v1035_v9 = vmul.f32 %v1002_v47, %v1949_v35  ;;  %v1267_v34 = vrot.slane %v1002_v47, %v2082_v60 }
 0x6b6   :  { %v1044_v0 = vadd.f32 %v1043_v53, %v1042_v55  ;;  %v1079_v58 = vadd.f32 %v1078_v27, %v1077_v32 }
 0x6b7   :  { %v1049_v10 = vsel %vm273_vm2, %v1035_v9, 0.0  ;;  %v1292_v26 = vsel %vm785_vm3, %v1267_v34, %v1263_v29 }
 0x6b8   :  { %v1050_v12 = vrot.slane %v1049_v10, 4  ;;  %v1007_v14 = vpop.permute.xlu1 %1006  ;;  %v1045_v31 = vrot.slane %v1044_v0, 2  ;;  %v1080_v63 = vrot.slane %v1079_v58, 2 }
 0x6b9   :  { %v1036_v17 = vmul.f32 %v1007_v14, %v1951_v36  ;;  %v1271_v36 = vrot.slane %v1007_v14, %v2082_v60 }
 0x6ba   :  { %v1051_v20 = vadd.f32 %v1050_v12, %v1049_v10  ;;  %v1046_v61 = vadd.f32 %v1045_v31, %v1044_v0  ;;  %v1081_v7 = vadd.f32 %v1080_v63, %v1079_v58 }
 0x6bb   :  { %v1056_v19 = vsel %vm273_vm2, %v1036_v17, 0.0  ;;  %v1293_v33 = vsel %vm787_vm4, %v1271_v36, %v1292_v26 }
 0x6bc   :  { %v1057_v21 = vrot.slane %v1056_v19, 4  ;;  %v1012_v23 = vpop.permute.xlu1 %1011  ;;  %v1052_v42 = vrot.slane %v1051_v20, 2  ;;  %v1047_v6 = vrot.slane %v1046_v61, 1 }
 0x6bd   :  { %v1037_v25 = vmul.f32 %v1012_v23, %v1958_v37  ;;  %v1275_v54 = vrot.slane %v1012_v23, %v2082_v60 }
 0x6be   :  { %v1058_v35 = vadd.f32 %v1057_v21, %v1056_v19  ;;  %v1053_v62 = vadd.f32 %v1052_v42, %v1051_v20  ;;  %v1082_v21 = vrot.slane %v1081_v7, 1 }
 0x6bf   :  { %v1063_v39 = vsel %vm273_vm2, %v1037_v25, 0.0  ;;  %v1294_v4 = vsel %vm789_vm5, %v1275_v54, %v1293_v33 }
 0x6c0   :  { %v1064_v30 = vrot.slane %v1063_v39, 4  ;;  %v1017_v45 = vpop.permute.xlu1 %1016  ;;  %v1059_v52 = vrot.slane %v1058_v35, 2  ;;  %v1054_v18 = vrot.slane %v1053_v62, 1 }
 0x6c1   :  { %v1038_v56 = vmul.f32 %v1017_v45, %v1960_v38  ;;  %v1279_v57 = vrot.slane %v1017_v45, %v2082_v60 }
 0x6c2   :  { %v1065_v37 = vadd.f32 %v1064_v30, %v1063_v39  ;;  %v1060_v44 = vadd.f32 %v1059_v52, %v1058_v35  ;;  %v1055_v10 = vadd.f32 %v1054_v18, %v1053_v62  ;;  %v1083_v30 = vadd.f32 %v1082_v21, %v1081_v7 }
 0x6c3   :  { %v1070_v28 = vsel %vm273_vm2, %v1038_v56, 0.0  ;;  %v1295_v24 = vsel %vm791_vm6, %v1279_v57, %v1294_v4 }
 0x6c4   :  { %v1066_v1 = vrot.slane %v1065_v37, 2  ;;  %v1071_v49 = vrot.slane %v1070_v28, 4  ;;  %v1027_v2 = vpop.permute.xlu1 %1026  ;;  %v1061_v15 = vrot.slane %v1060_v44, 1  ;;  %v1296_v5 = vsel %vm793_vm7, %v1283_v48, %v1295_v24 }
 0x6c5   :  { %v1040_v38 = vmul.f32 %v1027_v2, %v1968_v40  ;;  %v1287_v51 = vrot.slane %v1027_v2, %v2082_v60 }
 0x6c6   :  { %v1067_v50 = vadd.f32 %v1066_v1, %v1065_v37  ;;  %v1072_v8 = vadd.f32 %v1071_v49, %v1070_v28 }
 0x6c7   :  { %v1084_v3 = vsel %vm273_vm2, %v1040_v38, 0.0  ;;  %v1297_v47 = vsel %vm795_vm8, %v1287_v51, %v1296_v5 }
 0x6c8   :  { %v1073_v16 = vrot.slane %v1072_v8, 2  ;;  %v1085_v22 = vrot.slane %v1084_v3, 4  ;;  %v1032_v13 = vpop.permute.xlu1 %1031  ;;  %v1068_v59 = vrot.slane %v1067_v50, 1 }
 0x6c9   :  { %v1041_v43 = vmul.f32 %v1032_v13, %v1974_v41  ;;  %v1291_v40 = vrot.slane %v1032_v13, %v2082_v60  ;;  %v1062_v41 = vadd.f32 %v1061_v15, %v1060_v44  ;;  %v1048_v60 = vadd.f32 %v1047_v6, %v1046_v61 }
 0x6ca   :  { %v1074_v46 = vadd.f32 %v1073_v16, %v1072_v8  ;;  %v1086_v55 = vadd.f32 %v1085_v22, %v1084_v3  ;;  %v1069_v0 = vadd.f32 %v1068_v59, %v1067_v50 }
 0x6cb   :  { %v1091_v9 = vsel %vm273_vm2, %v1041_v43, 0.0  ;;  %v1298_v53 = vsel %vm797_vm9, %v1291_v40, %v1297_v47  ;;  %v1180_v23 = vsel %vm785_vm3, %v1055_v10, %v1048_v60 }
 0x6cc   :  { %v1075_v11 = vrot.slane %v1074_v46, 1  ;;  %v1087_v12 = vrot.slane %v1086_v55, 2  ;;  %v1092_v14 = vrot.slane %v1091_v9, 4  ;;  %v1099_v17 = vpop.permute.xlu1 %1098  ;;  %1300 = vst.msk [vmem:[#allocation18] sm:$0xff] %vm800_vm10, %v1298_v53  ;;  %v1181_v31 = vsel %vm787_vm4, %v1062_v41, %v1180_v23 }
 0x6cd   :  { %1303 = vst.msk [vmem:[#allocation17] sm:$0xff] %vm273_vm2, %v1099_v17  ;;  %1467 = vmatmul.mubr.msk.f32.vlgmr.msra.gmra.mxu1 %vm273_vm2, %v1099_v17  ;;  %v1182_v34 = vsel %vm789_vm5, %v1069_v0, %v1181_v31 }
 0x6ce   :  { %v1088_v19 = vadd.f32 %v1087_v12, %v1086_v55  ;;  %v1093_v32 = vadd.f32 %v1092_v14, %v1091_v9  ;;  %v1076_v20 = vadd.f32 %v1075_v11, %v1074_v46 }
 0x6d0   :  { %v1089_v25 = vrot.slane %v1088_v19, 1  ;;  %v1094_v35 = vrot.slane %v1093_v32, 2  ;;  %v1306_v27 = vpop.permute.xlu1 %1305  ;;  %v1183_v36 = vsel %vm791_vm6, %v1076_v20, %v1182_v34 }
 0x6d1   :  { %1309 = vst.msk [vmem:[#allocation17 + $0x8] sm:$0xff] %vm273_vm2, %v1306_v27  ;;  %v1184_v52 = vsel %vm793_vm7, %v1083_v30, %v1183_v36 }
 0x6d2   :  { %v1095_v39 = vadd.f32 %v1094_v35, %v1093_v32  ;;  %v1090_v42 = vadd.f32 %v1089_v25, %v1088_v19 }
 0x6d4   :  { %v1096_v45 = vrot.slane %v1095_v39, 1  ;;  %v1185_v54 = vsel %vm795_vm8, %v1090_v42, %v1184_v52 }
 0x6d6   :  { %v1097_v29 = vadd.f32 %v1096_v45, %v1095_v39 }
 0x6d8   :  { %v1186_v56 = vsel %vm797_vm9, %v1097_v29, %v1185_v54 }
 0x6d9   :  { %1478 = vmatmul.mubr.msk.f32.vlgmr.msra.gmra.mxu0 %vm273_vm2, %v1186_v56 }
 0x6da   :  { %1722 = shalt.err (!%p1719_p7)
}
 0x6db   :  { %1331 = dma.vmem_to_hbm [thread:$0]  %s1329_s29, 128, %s2215_s11, [#allocation19]  }
 0x6dc   :  { %s1731_s16 = scalar_lea.vmem %s1316_s13, 256  ;;  %p1736_p9 = scmp.lt.s32.totalorder %s1316_s13, %s1316_s13 }
 0x6dd   :  { %p1732_p8 = scmp.ne.s32.totalorder %s1316_s13, %s1731_s16  ;;  %p1737_p10 = scmp.lt.s32.totalorder %s1731_s16, %s1731_s16 }
 0x6df   :  { %p1738_p11 = por %p1737_p10, %p1736_p9 }
 0x6e1   :  { %p1739_p12 = pnand %p1738_p11, %p1732_p8 }
 0x6e3   :  { %1742 = shalt.err (!%p1739_p12)
}
 0x6e4   :  { %1321 = dma.vmem_to_hbm [thread:$0]  %s1316_s13, 256, %s2214_s10, [#allocation4], %s1786_s24, %s1786_s24, %s1787_s25  }
 0x6e5   :  { %s1805_s11 = smov [#allocation20]  }
 0x6e6   :  { %s1338_s1 = sshll.u32 %s1805_s11, 4  ;;  %s1339_s1 = int_to_ptr.vmem [resolvable:$true] %s1338_s1 }
 0x6e7   :  { %s1751_s18 = scalar_lea.vmem %s1339_s1, 128  ;;  %p1756_p0 = scmp.lt.s32.totalorder %s1339_s1, %s1339_s1 }
 0x6e8   :  { %p1752_p13 = scmp.ne.s32.totalorder %s1339_s1, %s1751_s18  ;;  %p1757_p1 = scmp.lt.s32.totalorder %s1751_s18, %s1751_s18 }
 0x6ea   :  { %p1758_p2 = por %p1757_p1, %p1756_p0 }
 0x6ec   :  { %p1759_p3 = pnand %p1758_p2, %p1752_p13 }
 0x78d   :  { %v1168_v37 = vpop.f32.mrf.mxu1 }
 0x78f   :  { %v1468_v57 = vpop.f32.mrf.mxu1 }
 0x799   :  { %v1255_v58 = vpop.f32.mrf.mxu0 }
 0x79a   :  { %v1256_v61 = vadd.f32 %v1255_v58, %v1168_v37 }
 0x79b   :  { %v1479_v26 = vpop.f32.mrf.mxu0 }
 0x79c   :  { %1529 = vtanh.f32 %v1256_v61 }
 0x7a9   :  { %v1530_v28 = vpop.eup %1529 }
 0x7aa   :  { %1301 = vst.msk [vmem:[#allocation20] sm:$0xff] %vm273_vm2, %v1530_v28 }
 0x7ab   :  { %1762 = shalt.err (!%p1759_p3)
}
 0x7ac   :  { %1341 = dma.vmem_to_hbm [thread:$0]  %s1339_s1, 128, %s2216_s12, [#allocation19]  }
 0x7ad   :  { %1781 = dma.done.wait [#allocation4], 256  }
 0x7ae   :  { %1782 = vsyncadd [#allocation4], 4294967040 }
 0x7af   :  { %1783 = dma.done.wait [#allocation19], 256  }
 0x7b0   :  { %1784 = vsyncadd [#allocation19], 4294967040 }
 0x7b1   :  { %1351 = vsyncpa [#allocation3], 1 }
 0x7b2   :  { %1352 = vsyncpa [#allocation6], 1 }
 0x7b3   :  { %1353 = vsyncpa [#allocation9], 1 }
 0x7b4   :  { %1354 = vsyncpa [#allocation12], 1 }
 0x7b5   :  { %1355 = vsyncpa [#allocation15], 1 }
 0x7b6   :  { %1356 = vsyncpa [#allocation4], 1 }
 0x7b7   :  { %1357 = vsyncpa [#allocation19], 1 }

</bundles_post_ra>
